<compile_context>
chip_gen: v6e
topology: v6e:2x2x1
jax: 0.10.0
libtpu: 0.0.40
codegen_flags: <defaults>
</compile_context>

<pallas_src>
import jax
import jax.numpy as jnp
from jax.experimental import pallas as pl
from jax.experimental.pallas import tpu as pltpu

IN_DIM = 2
HID = 128
OUT_DIM = 128

TM_MAX = 4096          # batch tile cap (multiple of 256 for v6e/v7x, 128 for v5e)
SMALL_BATCH = 1024     # at or below this, a single sublane-aligned tile is used
VMEM_LIMIT = 32 * 1024 * 1024   # raise v5e's 16 MiB scoped default; <= v7x's 32 MiB


def _round_up(v, m):
    return ((v + m - 1) // m) * m


def tofnn_kernel(x_ref, w1_ref, b1_ref, w2_ref, b2_ref, w3_ref, b3_ref, o_ref):
    x = x_ref[...]

    # Layer 1: Linear(2, 128) + ReLU.  K=2 would be a pathologically padded
    # MXU pass, so do it as two VPU broadcast-FMAs.  Cast the result once to
    # bf16 so layers 2/3 run as native single-pass bf16 MXU matmuls and the
    # spilled (tm, 128) intermediate halves its VMEM / vector-store traffic.
    h1 = (x[:, 0:1] * w1_ref[0:1, :]
          + x[:, 1:2] * w1_ref[1:2, :]
          + b1_ref[...])
    h1 = jnp.maximum(h1, 0.0).astype(jnp.bfloat16)   # Dropout = identity (eval)

    # Layer 2: Linear(128, 128) + ReLU.  bf16 MXU inputs, f32 accumulation.
    h2 = jnp.dot(h1, w2_ref[...], preferred_element_type=jnp.float32)
    h2 = jnp.maximum(h2 + b2_ref[...], 0.0).astype(jnp.bfloat16)  # Dropout = id

    # Layer 3: Linear(128, 128).  bf16 MXU inputs, f32 accumulation.
    o = jnp.dot(h2, w3_ref[...], preferred_element_type=jnp.float32)
    o_ref[...] = (o + b3_ref[...]).astype(o_ref.dtype)


@jax.jit
def tofnn_forward(x, w1, b1, w2, b2, w3, b3):
    n = x.shape[0]

    # --- batch-tile selection (shapes are static under jit) -----------------
    if n <= SMALL_BATCH:
        # Tiny batches: one sublane-aligned tile; never pad 8 rows up to 4096.
        tm = _round_up(max(n, 8), 8)
    else:
        # At least 2 grid steps so both v7x TensorCores get work on the
        # "parallel" batch axis; capped at TM_MAX to bound VMEM.
        tm = min(TM_MAX, _round_up(-(-n // 2), 256))

    grid_n = -(-n // tm)            # ceil-div
    n_pad = grid_n * tm

    # Pad x (8 bytes/row — negligible) so every *input* block is in bounds.
    if n_pad != n:
        x = jnp.pad(x, ((0, n_pad - n), (0, 0)))

    # Output rows:
    #  * multi-tile grids write the logical (n, 128) array directly; the
    #    ragged last block is a partial block whose out-of-bounds rows are
    #    dropped, so no post-kernel out[:n] copy of the store-bound output.
    #  * single-tile grids keep the padded shape (a block never exceeds the
    #    array) and pay a cheap <= 1024-row tail slice instead.
    out_rows = n if grid_n > 1 else n_pad

    # MXU inputs in bf16; biases (and the VPU layer-1 weights) stay f32.
    w2_b = w2.astype(jnp.bfloat16)
    w3_b = w3.astype(jnp.bfloat16)

    # Weights/biases (~100 KiB total): whole-array resident in VMEM, loaded
    # once, no per-step blocking.  Only the x tile and output tile pipeline.
    w_resident = pl.BlockSpec(memory_space=pltpu.MemorySpace.VMEM)

    cost = pl.CostEstimate(
        flops=2 * n_pad * HID * (IN_DIM + HID + HID),
        transcendentals=0,
        bytes_accessed=(n_pad * (IN_DIM * 4 + OUT_DIM * 4)
                        + 2 * HID * HID * 2          # W2, W3 in bf16
                        + IN_DIM * HID * 4 + 3 * HID * 4),
    )

    out = pl.pallas_call(
        tofnn_kernel,
        out_shape=jax.ShapeDtypeStruct((out_rows, OUT_DIM), jnp.float32),
        grid_spec=pltpu.PrefetchScalarGridSpec(
            num_scalar_prefetch=0,
            grid=(grid_n,),
            in_specs=[
                pl.BlockSpec((tm, IN_DIM), lambda i: (i, 0)),  # x tile
                w_resident,  # W1 (2, 128)   f32
                w_resident,  # b1 (1, 128)   f32
                w_resident,  # W2 (128, 128) bf16
                w_resident,  # b2 (1, 128)   f32
                w_resident,  # W3 (128, 128) bf16
                w_resident,  # b3 (1, 128)   f32
            ],
            out_specs=pl.BlockSpec((tm, OUT_DIM), lambda i: (i, 0)),
        ),
        compiler_params=pltpu.CompilerParams(
            dimension_semantics=("parallel",),      # shards batch across v7x TCs
            vmem_limit_bytes=VMEM_LIMIT),
        cost_estimate=cost,
    )(x, w1, b1, w2_b, b2, w3_b, b3)

    return out[:n] if out_rows != n else out


def init_params(key):
    """Deterministic init matching PyTorch Linear's U(-1/sqrt(fan_in), ...)."""
    ks = jax.random.split(key, 6)

    def linear(kw, kb, fan_in, fan_out):
        bound = 1.0 / float(fan_in) ** 0.5
        w = jax.random.uniform(kw, (fan_in, fan_out), jnp.float32, -bound, bound)
        b = jax.random.uniform(kb, (1, fan_out), jnp.float32, -bound, bound)
        return w, b

    w1, b1 = linear(ks[0], ks[1], IN_DIM, HID)
    w2, b2 = linear(ks[2], ks[3], HID, HID)
    w3, b3 = linear(ks[4], ks[5], HID, OUT_DIM)
    return w1, b1, w2, b2, w3, b3


def reference_f32(x, w1, b1, w2, b2, w3, b3):
    hi = jax.lax.Precision.HIGHEST
    h1 = jnp.maximum(jnp.dot(x, w1, precision=hi) + b1, 0.0)
    h2 = jnp.maximum(jnp.dot(h1, w2, precision=hi) + b2, 0.0)
    return jnp.dot(h2, w3, precision=hi) + b3


def reference_bf16(x, w1, b1, w2, b2, w3, b3):
    # Same bf16-on-the-MXU numerics as the kernel (f32 accumulation), with the
    # K=2 first layer expressed the same way as the in-kernel broadcast-FMA.
    h1 = jnp.maximum(x[:, 0:1] * w1[0:1, :] + x[:, 1:2] * w1[1:2, :] + b1, 0.0)
    h1 = h1.astype(jnp.bfloat16)
    h2 = jnp.dot(h1, w2.astype(jnp.bfloat16), preferred_element_type=jnp.float32)
    h2 = jnp.maximum(h2 + b2, 0.0).astype(jnp.bfloat16)
    o = jnp.dot(h2, w3.astype(jnp.bfloat16), preferred_element_type=jnp.float32)
    return o + b3


if __name__ == "__main__":
    key = jax.random.PRNGKey(0)
    k_param, k1, k2, k3 = jax.random.split(key, 4)
    params = init_params(k_param)

    def check(x):
        out = tofnn_forward(x, *params)
        jax.block_until_ready(out)
        assert out.shape == (x.shape[0], OUT_DIM)
        assert out.dtype == jnp.float32
        # Tight check vs a reference with matched bf16 numerics.
        ref_b = reference_bf16(x, *params)
        assert jnp.allclose(out, ref_b, rtol=2e-3, atol=2e-3), "mismatch vs bf16 reference"
        # Loose check vs the full-f32 reference (bf16 MXU inputs trade ~1e-3
        # absolute error for ~3x matmul throughput; f32 accumulation bounds it).
        ref_f = reference_f32(x, *params)
        assert jnp.allclose(out, ref_f, rtol=5e-2, atol=5e-2), "mismatch vs f32 reference"

    # Small aligned batch (single tile, tm = 8).
    check(jax.random.normal(k1, (8, IN_DIM), jnp.float32))

    # Ragged small batch (single tile, padded output + cheap tail slice).
    check(jax.random.normal(k2, (300, IN_DIM), jnp.float32))

    # Multi-tile ragged batch: two grid steps (both v7x TCs), partial last
    # output block, no post-kernel output copy.
    check(jax.random.normal(k3, (2500, IN_DIM), jnp.float32))

    print("KERNEL_OK")
</pallas_src>

<mosaic_0001>
module attributes {stable_mosaic.version = 11 : i64} {
  func.func @tofnn_kernel(%arg0: i32, %arg1: memref<8x2xf32, #tpu.memory_space<vmem>>, %arg2: memref<2x128xf32, #tpu.memory_space<vmem>>, %arg3: memref<1x128xf32, #tpu.memory_space<vmem>>, %arg4: memref<128x128xbf16, #tpu.memory_space<vmem>>, %arg5: memref<1x128xf32, #tpu.memory_space<vmem>>, %arg6: memref<128x128xbf16, #tpu.memory_space<vmem>>, %arg7: memref<1x128xf32, #tpu.memory_space<vmem>>, %arg8: memref<8x128xf32, #tpu.memory_space<vmem>>) attributes {dimension_semantics = [#tpu.dimension_semantics<parallel>], iteration_bounds = array<i64: 1>, scalar_prefetch = 0 : i64, scratch_operands = 0 : i64, tpu.core_type = #tpu.core_type<tc>, window_params = [{transform_indices = @transform_0, window_bounds = array<i64: 8, 2>}, {pipeline_mode = #tpu.pipeline_mode<synchronous>, transform_indices = @transform_1, window_bounds = array<i64: 2, 128>}, {pipeline_mode = #tpu.pipeline_mode<synchronous>, transform_indices = @transform_2, window_bounds = array<i64: 1, 128>}, {pipeline_mode = #tpu.pipeline_mode<synchronous>, transform_indices = @transform_3, window_bounds = array<i64: 128, 128>}, {pipeline_mode = #tpu.pipeline_mode<synchronous>, transform_indices = @transform_4, window_bounds = array<i64: 1, 128>}, {pipeline_mode = #tpu.pipeline_mode<synchronous>, transform_indices = @transform_5, window_bounds = array<i64: 128, 128>}, {pipeline_mode = #tpu.pipeline_mode<synchronous>, transform_indices = @transform_6, window_bounds = array<i64: 1, 128>}, {transform_indices = @transform_7, window_bounds = array<i64: 8, 128>}]} {
    %c0 = arith.constant 0 : index
    %c0_0 = arith.constant 0 : index
    %0 = vector.load %arg1[%c0, %c0_0] : memref<8x2xf32, #tpu.memory_space<vmem>>, vector<8x2xf32>
    %1 = vector.extract_strided_slice %0 {offsets = [0, 0], sizes = [8, 1], strides = [1, 1]} : vector<8x2xf32> to vector<8x1xf32>
    %c0_1 = arith.constant 0 : index
    %c0_2 = arith.constant 0 : index
    %2 = vector.load %arg2[%c0_1, %c0_2] : memref<2x128xf32, #tpu.memory_space<vmem>>, vector<1x128xf32>
    %3 = vector.broadcast %1 : vector<8x1xf32> to vector<8x128xf32>
    %4 = vector.broadcast %2 : vector<1x128xf32> to vector<8x128xf32>
    %5 = arith.mulf %3, %4 : vector<8x128xf32>
    %6 = vector.extract_strided_slice %0 {offsets = [0, 1], sizes = [8, 1], strides = [1, 1]} : vector<8x2xf32> to vector<8x1xf32>
    %c1 = arith.constant 1 : index
    %c0_3 = arith.constant 0 : index
    %7 = vector.load %arg2[%c1, %c0_3] : memref<2x128xf32, #tpu.memory_space<vmem>>, vector<1x128xf32>
    %8 = vector.broadcast %6 : vector<8x1xf32> to vector<8x128xf32>
    %9 = vector.broadcast %7 : vector<1x128xf32> to vector<8x128xf32>
    %10 = arith.mulf %8, %9 : vector<8x128xf32>
    %11 = arith.addf %5, %10 : vector<8x128xf32>
    %c0_4 = arith.constant 0 : index
    %c0_5 = arith.constant 0 : index
    %12 = vector.load %arg3[%c0_4, %c0_5] : memref<1x128xf32, #tpu.memory_space<vmem>>, vector<1x128xf32>
    %13 = vector.broadcast %12 : vector<1x128xf32> to vector<8x128xf32>
    %14 = arith.addf %11, %13 : vector<8x128xf32>
    %cst = arith.constant 0.000000e+00 : f32
    %15 = vector.broadcast %cst : f32 to vector<8x128xf32>
    %16 = arith.maximumf %14, %15 : vector<8x128xf32>
    %17 = arith.truncf %16 : vector<8x128xf32> to vector<8x128xbf16>
    %c0_6 = arith.constant 0 : index
    %c0_7 = arith.constant 0 : index
    %18 = vector.load %arg4[%c0_6, %c0_7] : memref<128x128xbf16, #tpu.memory_space<vmem>>, vector<128x128xbf16>
    %cst_8 = arith.constant dense<0.000000e+00> : vector<8x128xf32>
    %19 = tpu.matmul %17, %18, %cst_8 {dimension_numbers = #tpu.dot_dimension_numbers<[1], [0], [0], [1], [0, 0, 1, 1], [], []>} : vector<8x128xbf16>, vector<128x128xbf16>, vector<8x128xf32> -> vector<8x128xf32>
    %c0_9 = arith.constant 0 : index
    %c0_10 = arith.constant 0 : index
    %20 = vector.load %arg5[%c0_9, %c0_10] : memref<1x128xf32, #tpu.memory_space<vmem>>, vector<1x128xf32>
    %21 = vector.broadcast %20 : vector<1x128xf32> to vector<8x128xf32>
    %22 = arith.addf %19, %21 : vector<8x128xf32>
    %cst_11 = arith.constant 0.000000e+00 : f32
    %23 = vector.broadcast %cst_11 : f32 to vector<8x128xf32>
    %24 = arith.maximumf %22, %23 : vector<8x128xf32>
    %25 = arith.truncf %24 : vector<8x128xf32> to vector<8x128xbf16>
    %c0_12 = arith.constant 0 : index
    %c0_13 = arith.constant 0 : index
    %26 = vector.load %arg6[%c0_12, %c0_13] : memref<128x128xbf16, #tpu.memory_space<vmem>>, vector<128x128xbf16>
    %cst_14 = arith.constant dense<0.000000e+00> : vector<8x128xf32>
    %27 = tpu.matmul %25, %26, %cst_14 {dimension_numbers = #tpu.dot_dimension_numbers<[1], [0], [0], [1], [0, 0, 1, 1], [], []>} : vector<8x128xbf16>, vector<128x128xbf16>, vector<8x128xf32> -> vector<8x128xf32>
    %c0_15 = arith.constant 0 : index
    %c0_16 = arith.constant 0 : index
    %28 = vector.load %arg7[%c0_15, %c0_16] : memref<1x128xf32, #tpu.memory_space<vmem>>, vector<1x128xf32>
    %29 = vector.broadcast %28 : vector<1x128xf32> to vector<8x128xf32>
    %30 = arith.addf %27, %29 : vector<8x128xf32>
    %c0_17 = arith.constant 0 : index
    %c0_18 = arith.constant 0 : index
    %31 = vector.load %arg8[%c0_17, %c0_18] : memref<8x128xf32, #tpu.memory_space<vmem>>, vector<8x128xf32>
    tpu.vector_store %arg8[%c0_17, %c0_18], %30 {strides = array<i32>} : memref<8x128xf32, #tpu.memory_space<vmem>>, vector<8x128xf32>,
    return
  }
  func.func @transform_0(%arg0: i32) -> (i32, i32) {
    %c0_i32 = arith.constant 0 : i32
    %c0_i32_0 = arith.constant 0 : i32
    return %arg0, %c0_i32 : i32, i32
  }
  func.func @transform_1(%arg0: i32) -> (i32, i32) {
    %c0_i32 = arith.constant 0 : i32
    %c0_i32_0 = arith.constant 0 : i32
    %c0_i32_1 = arith.constant 0 : i32
    return %c0_i32, %c0_i32_0 : i32, i32
  }
  func.func @transform_2(%arg0: i32) -> (i32, i32) {
    %c0_i32 = arith.constant 0 : i32
    %c0_i32_0 = arith.constant 0 : i32
    %c0_i32_1 = arith.constant 0 : i32
    return %c0_i32, %c0_i32_0 : i32, i32
  }
  func.func @transform_3(%arg0: i32) -> (i32, i32) {
    %c0_i32 = arith.constant 0 : i32
    %c0_i32_0 = arith.constant 0 : i32
    %c0_i32_1 = arith.constant 0 : i32
    return %c0_i32, %c0_i32_0 : i32, i32
  }
  func.func @transform_4(%arg0: i32) -> (i32, i32) {
    %c0_i32 = arith.constant 0 : i32
    %c0_i32_0 = arith.constant 0 : i32
    %c0_i32_1 = arith.constant 0 : i32
    return %c0_i32, %c0_i32_0 : i32, i32
  }
  func.func @transform_5(%arg0: i32) -> (i32, i32) {
    %c0_i32 = arith.constant 0 : i32
    %c0_i32_0 = arith.constant 0 : i32
    %c0_i32_1 = arith.constant 0 : i32
    return %c0_i32, %c0_i32_0 : i32, i32
  }
  func.func @transform_6(%arg0: i32) -> (i32, i32) {
    %c0_i32 = arith.constant 0 : i32
    %c0_i32_0 = arith.constant 0 : i32
    %c0_i32_1 = arith.constant 0 : i32
    return %c0_i32, %c0_i32_0 : i32, i32
  }
  func.func @transform_7(%arg0: i32) -> (i32, i32) {
    %c0_i32 = arith.constant 0 : i32
    %c0_i32_0 = arith.constant 0 : i32
    return %arg0, %c0_i32 : i32, i32
  }
}

</mosaic_0001>

<bundles_post_ra>
// kernel: tofnn_forward.1
= control target key start
LH: loop header
LB: loop body
LE: loop exit
PB: predicated region body
PF: predicated region fallthrough
CT: control target
= control target key end

     0   :  { %v424_v1 = vmov 0   ;;  %v425_v2 = vmov 0.0   ;;  %v426_v5 = vmov 1   ;;  %vm427_vm0 = vmmov 0   ;;  %s556_s0 = inlined_call_operand.vmem [shape: f32[8,2], index: 0, kind: input, shape index: {}]   ;;  %s557_s1 = inlined_call_operand.vmem [shape: f32[2,128], index: 1, kind: input, shape index: {}]   ;;  %s558_s2 = inlined_call_operand.vmem [shape: f32[1,128], index: 2, kind: input, shape index: {}]   ;;  %s559_s3 = inlined_call_operand.vmem [shape: bf16[128,128], index: 3, kind: input, shape index: {}]   ;;  %s560_s4 = inlined_call_operand.vmem [shape: f32[1,128], index: 4, kind: input, shape index: {}]   ;;  %s561_s5 = inlined_call_operand.vmem [shape: bf16[128,128], index: 5, kind: input, shape index: {}]   ;;  %s562_s6 = inlined_call_operand.vmem [shape: f32[1,128], index: 6, kind: input, shape index: {}]   ;;  %s563_s7 = inlined_call_operand.hbm [shape: f32[8,128], index: 7, kind: output, shape index: {}]  }
   0x1   :  { %v28_v0 = vld [vmem:[%s556_s0] sm:$0xff]  ;;  %384 = vset.pattern.permute.xlu0 %v424_v1  ;;  %339 = vmatprep.subr.bf16.mxu0 %v425_v2  ;;  %v386_v3 = vld [vmem:[%s559_s3 + $0x38] sm:$0xff]   ;;  %v387_v4 = vld [vmem:[%s559_s3 + $0x30] sm:$0xff]  }
   0x2   :  { %32 = vperm.xlu0 %384, %v28_v0   ;;  %359 = vmatprep.subr.bf16.mxu1 %v425_v2  ;;  %v388_v6 = vld [vmem:[%s559_s3 + $0x28] sm:$0xff]   ;;  %v389_v7 = vld [vmem:[%s559_s3 + $0x20] sm:$0xff]   ;;  %v394_v8 = vld [vmem:[%s561_s5 + $0x38] sm:$0xff]  }
   0x3   :  { %340 = vmatpush3.bf16.msra.mxu0 %v386_v3  ;;  %355 = vmatprep.mubr.msk.bf16.mxu0 %vm427_vm0, %v425_v2  ;;  %v390_v9 = vld [vmem:[%s559_s3 + $0x18] sm:$0xff]   ;;  %v395_v10 = vld [vmem:[%s561_s5 + $0x30] sm:$0xff]  }
   0x4   :  { %341 = vmatprep.subr.bf16.mxu0 %v425_v2  ;;  %375 = vmatprep.mubr.msk.bf16.mxu1 %vm427_vm0, %v425_v2 }
   0x5   :  { %360 = vmatpush3.bf16.msra.mxu1 %v394_v8 }
   0x6   :  { %385 = vset.pattern.permute.xlu0 %v426_v5  ;;  %361 = vmatprep.subr.bf16.mxu1 %v425_v2 }
   0x7   :  { %42 = vperm.xlu0 %385, %v28_v0   ;;  %342 = vmatpush3.bf16.msra.mxu0 %v387_v4 }
   0x8   :  { %343 = vmatprep.subr.bf16.mxu0 %v425_v2 }
   0xb   :  { %344 = vmatpush3.bf16.msra.mxu0 %v388_v6 }
   0xc   :  { %345 = vmatprep.subr.bf16.mxu0 %v425_v2 }
   0xf   :  { %346 = vmatpush3.bf16.msra.mxu0 %v389_v7 }
  0x10   :  { %347 = vmatprep.subr.bf16.mxu0 %v425_v2 }
  0x11   :  { %12 = vsyncpa [#allocation3], 0  ;;  %v391_v11 = vld [vmem:[%s559_s3 + $0x10] sm:$0xff]   ;;  %362 = vmatpush3.bf16.msra.mxu1 %v395_v10  ;;  %v396_v12 = vld [vmem:[%s561_s5 + $0x28] sm:$0xff]   ;;  %s428_s17 = smov [#allocation2]  }
  0x12   :  { %363 = vmatprep.subr.bf16.mxu1 %v425_v2  ;;  %v392_v13 = vld [vmem:[%s559_s3 + $0x8] sm:$0xff]   ;;  %v397_v14 = vld [vmem:[%s561_s5 + $0x20] sm:$0xff]   ;;  %v398_v16 = vld [vmem:[%s561_s5 + $0x18] sm:$0xff]   ;;  %s292_s18 = sshll.u32 %s428_s17, 4  ;;  %s293_s18 = int_to_ptr.vmem [resolvable:$true] %s292_s18 }
  0x13   :  { %348 = vmatpush3.bf16.msra.mxu0 %v390_v9  ;;  %v393_v15 = vld [vmem:[%s559_s3] sm:$0xff]   ;;  %v399_v17 = vld [vmem:[%s561_s5 + $0x10] sm:$0xff]   ;;  %v400_v29 = vld [vmem:[%s561_s5 + $0x8] sm:$0xff]   ;;  %p407_p1 = scmp.lt.s32.totalorder %s293_s18, %s293_s18 }
  0x14   :  { %349 = vmatprep.subr.bf16.mxu0 %v425_v2  ;;  %v300_v19 = vld [vmem:[%s557_s1] ss:$0 sm:$0xff]  ;;  %v301_v20 = vld [vmem:[%s557_s1 + $0x1] ss:$0 sm:$0xff] }
  0x15   :  { %364 = vmatpush3.bf16.msra.mxu1 %v396_v12  ;;  %v302_v24 = vld [vmem:[%s558_s2] ss:$0 sm:$0xff] }
  0x16   :  { %365 = vmatprep.subr.bf16.mxu1 %v425_v2  ;;  %v401_v30 = vld [vmem:[%s561_s5] sm:$0xff]  }
  0x17   :  { %350 = vmatpush3.bf16.msra.mxu0 %v391_v11  ;;  %v303_v31 = vld [vmem:[%s560_s4] ss:$0 sm:$0xff]  ;;  %s402_s4 = scalar_lea.vmem %s293_s18, 128 }
  0x18   :  { %351 = vmatprep.subr.bf16.mxu0 %v425_v2  ;;  %v312_v39 = vld [vmem:[%s562_s6] ss:$0 sm:$0xff]  ;;  %p403_p0 = scmp.ne.s32.totalorder %s293_s18, %s402_s4  ;;  %p408_p2 = scmp.lt.s32.totalorder %s402_s4, %s402_s4 }
  0x19   :  { %366 = vmatpush3.bf16.msra.mxu1 %v397_v14 }
  0x1a   :  { %367 = vmatprep.subr.bf16.mxu1 %v425_v2  ;;  %p409_p3 = por %p408_p2, %p407_p1 }
  0x1b   :  { %352 = vmatpush3.bf16.msra.mxu0 %v392_v13 }
  0x1c   :  { %353 = vmatprep.subr.bf16.mxu0 %v425_v2  ;;  %p410_p4 = pnand %p409_p3, %p403_p0 }
  0x1d   :  { %368 = vmatpush3.bf16.msra.mxu1 %v398_v16 }
  0x1e   :  { %369 = vmatprep.subr.bf16.mxu1 %v425_v2 }
  0x1f   :  { %354 = vmatpush3.bf16.msra.mxu0 %v393_v15 }
  0x21   :  { %370 = vmatpush3.bf16.msra.mxu1 %v399_v17 }
  0x22   :  { %371 = vmatprep.subr.bf16.mxu1 %v425_v2 }
  0x25   :  { %372 = vmatpush3.bf16.msra.mxu1 %v400_v29 }
  0x26   :  { %373 = vmatprep.subr.bf16.mxu1 %v425_v2 }
  0x29   :  { %374 = vmatpush3.bf16.msra.mxu1 %v401_v30 }
  0x7d   :  { %v33_v18 = vpop.permute.xlu0 %32 }
  0x7e   :  { %v39_v22 = vmul.f32 %v300_v19, %v33_v18 }
  0x82   :  { %v43_v21 = vpop.permute.xlu0 %42 }
  0x83   :  { %v49_v23 = vmul.f32 %v301_v20, %v43_v21 }
  0x85   :  { %v50_v25 = vadd.f32 %v49_v23, %v39_v22 }
  0x87   :  { %v58_v26 = vadd.f32 %v302_v24, %v50_v25 }
  0x89   :  { %v59_v27 = vmax.f32 %v58_v26, 0.0 }
  0x8b   :  { %v60_v28 = vpack.c.bf16 %v59_v27, %v59_v27 }
  0x8d   :  { %356 = vmatmul.mubr.bf16.vlgmr.msra.gmra.mxu0 %v60_v28 }
 0x14d   :  { %v166_v32 = vpop.f32.mrf.mxu0 }
 0x14e   :  { %v167_v33 = vadd.f32 %v303_v31, %v166_v32 }
 0x14f   :  { %v357_v34 = vpop.f32.mrf.mxu0 }
 0x150   :  { %v172_v35 = vmax.f32 %v167_v33, 0.0 }
 0x151   :  { %v169_v36 = vpop.f32.mrf.mxu0 }
 0x152   :  { %v173_v37 = vpack.c.bf16 %v172_v35, %v172_v35 }
 0x153   :  { %v358_v38 = vpop.f32.mrf.mxu0 }
 0x154   :  { %376 = vmatmul.mubr.bf16.vlgmr.msra.gmra.mxu1 %v173_v37 }
 0x214   :  { %v279_v40 = vpop.f32.mrf.mxu1 }
 0x215   :  { %v280_v41 = vadd.f32 %v312_v39, %v279_v40 }
 0x216   :  { %v377_v42 = vpop.f32.mrf.mxu1 }
 0x217   :  { %285 = vst [vmem:[#allocation2] sm:$0xff] %v280_v41 }
 0x218   :  { %v282_v43 = vpop.f32.mrf.mxu1 }
 0x219   :  { %413 = shalt.err (!%p410_p4)
}
 0x21a   :  { %295 = dma.vmem_to_hbm [thread:$0]  %s293_s18, 128, %s563_s7, [#allocation3]   ;;  %v378_v44 = vpop.f32.mrf.mxu1 }
 0x21b   :  { %422 = dma.done.wait [#allocation3], 128  }
 0x21c   :  { %423 = vsyncadd [#allocation3], 4294967168 }
 0x21d   :  { %299 = vsyncpa [#allocation3], 1 }

</bundles_post_ra>
